<compile_context>
chip_gen: v6e
topology: v6e:2x2x1
jax: 0.10.0
libtpu: 0.0.40
codegen_flags: <defaults>
</compile_context>

<pallas_src>
import jax
import jax.numpy as jnp
from jax.experimental import pallas as pl
from jax.experimental.pallas import tpu as pltpu

OUT_PAD = 128       # lane-dense padded class count
MAX_TILE_B = 1024   # per-step batch tile upper bound (mem-bound sweet spot)


def _round_up(x, m):
    return (x + m - 1) // m * m


def _cdiv(a, b):
    return (a + b - 1) // b


def _choose_tiling(batch, max_tile=MAX_TILE_B):
    """Pick (tile_b, b_pad, n_tiles) so padding is <8 rows and, when the batch
    is big enough, there are >=2 grid steps (both v7x TensorCores get work)."""
    n_tiles = max(_cdiv(batch, max_tile), 1)
    if batch >= 16 and n_tiles < 2:
        n_tiles = 2
    tile_b = _round_up(_cdiv(batch, n_tiles), 8)
    b_pad = n_tiles * tile_b
    return tile_b, b_pad, n_tiles


def mlp_kernel(x_ref, w1_ref, b1_ref, w2_ref, b2_ref, w3_ref, b3_ref, o_ref):
    # Cast x to bf16 in-kernel (free VPU filler under a mem-bound kernel).
    x_bf = x_ref[...].astype(jnp.bfloat16)

    # fc1 + relu  (bf16 MXU inputs, f32 accumulate)
    h1 = jnp.dot(x_bf, w1_ref[...], preferred_element_type=jnp.float32)
    h1 = jnp.maximum(h1 + b1_ref[...], 0.0)

    # TODO(synk): F.dropout is identity in eval mode; training-mode dropout
    # (pltpu.prng_random_bits mask) is intentionally not applied here.

    # fc2 + relu
    h2 = jnp.dot(h1.astype(jnp.bfloat16), w2_ref[...],
                 preferred_element_type=jnp.float32)
    h2 = jnp.maximum(h2 + b2_ref[...], 0.0)

    # fc3 (padded to 128 lanes) + softmax over the feature axis.
    logits = jnp.dot(h2.astype(jnp.bfloat16), w3_ref[...],
                     preferred_element_type=jnp.float32)
    logits = logits + b3_ref[...]          # pad columns carry bias = -1e30 (f32)
    m = jnp.max(logits, axis=1, keepdims=True)
    e = jnp.exp(logits - m)                # exp(-huge) -> 0 on pad columns
    denom = jnp.sum(e, axis=1, keepdims=True)
    # Divide on the EUP (approx reciprocal) instead of the VALU; store bf16
    # so the dominant output HBM stream is halved.
    o_ref[...] = (e * pl.reciprocal(denom, approx=True)).astype(o_ref.dtype)


@jax.jit
def _mlp_forward_padded(x, w1, b1, w2, b2, w3p, b3p):
    """x: [B, in_dim] f32; wi: [fan_in, fan_out] f32; bi: [1, fan_out] f32.
    w3p/b3p already padded to OUT_PAD columns. Returns padded bf16
    probabilities of shape [b_pad, OUT_PAD]."""
    B, in_dim = x.shape
    h1 = w1.shape[1]
    h2 = w2.shape[1]
    out_pad = w3p.shape[1]

    tile_b, b_pad, n_tiles = _choose_tiling(B)
    if b_pad != B:
        x = jnp.pad(x, ((0, b_pad - B), (0, 0)))

    # Weights are tiny -> cast to bf16 once here; they stay VMEM-resident.
    w1_bf = w1.astype(jnp.bfloat16)
    w2_bf = w2.astype(jnp.bfloat16)
    w3_bf = w3p.astype(jnp.bfloat16)

    const = lambda i: (0, 0)  # weights/biases resident across the grid

    flops = 2 * b_pad * (in_dim * h1 + h1 * h2 + h2 * out_pad)
    bytes_accessed = (
        b_pad * in_dim * 4                                   # x (f32 in)
        + b_pad * out_pad * 2                                # out (bf16)
        + (w1_bf.size + w2_bf.size + w3_bf.size) * 2         # bf16 weights
        + (b1.size + b2.size + b3p.size) * 4                 # f32 biases
    )

    out = pl.pallas_call(
        mlp_kernel,
        out_shape=jax.ShapeDtypeStruct((b_pad, out_pad), jnp.bfloat16),
        grid=(n_tiles,),
        in_specs=[
            pl.BlockSpec((tile_b, in_dim), lambda i: (i, 0)),   # x tile (f32)
            pl.BlockSpec((in_dim, h1), const),                  # W1 (bf16)
            pl.BlockSpec((1, h1), const),                       # b1 (f32)
            pl.BlockSpec((h1, h2), const),                      # W2 (bf16)
            pl.BlockSpec((1, h2), const),                       # b2 (f32)
            pl.BlockSpec((h2, out_pad), const),                 # W3 padded (bf16)
            pl.BlockSpec((1, out_pad), const),                  # b3 padded (f32)
        ],
        out_specs=pl.BlockSpec((tile_b, out_pad), lambda i: (i, 0)),
        compiler_params=pltpu.CompilerParams(
            dimension_semantics=("parallel",)),
        cost_estimate=pl.CostEstimate(
            flops=flops,
            transcendentals=b_pad * (out_pad + 1),
            bytes_accessed=bytes_accessed),
    )(x, w1_bf, b1, w2_bf, b2, w3_bf, b3p)

    return out


def mlp_forward(x, w1, b1, w2, b2, w3p, b3p, *, out_dim):
    out = _mlp_forward_padded(x, w1, b1, w2, b2, w3p, b3p)
    # Single fused XLA op: slice away batch/class padding + upcast to f32.
    return out[: x.shape[0], :out_dim].astype(jnp.float32)


def init_linear_params(key, fan_in, fan_out):
    """nn.Linear default init: U(-1/sqrt(fan_in), +1/sqrt(fan_in)).
    Weight is returned already transposed to [fan_in, fan_out]."""
    kw, kb = jax.random.split(key)
    bound = 1.0 / jnp.sqrt(jnp.float32(fan_in))
    w = jax.random.uniform(kw, (fan_in, fan_out), jnp.float32, -bound, bound)
    b = jax.random.uniform(kb, (1, fan_out), jnp.float32, -bound, bound)
    return w, b


def pad_fc3(w3, b3, out_pad=OUT_PAD):
    """Pad fc3 to a lane-dense column count. Pad weights are 0 and pad biases
    are -1e30 so softmax gives pad classes ~0 probability.
    NOTE: keep b3p in f32/bf16 — the -1e30 sentinel overflows fp16."""
    h2, out_dim = w3.shape
    w3p = jnp.zeros((h2, out_pad), w3.dtype).at[:, :out_dim].set(w3)
    b3p = jnp.full((1, out_pad), -1e30, b3.dtype).at[:, :out_dim].set(b3)
    return w3p, b3p


if __name__ == "__main__":
    # MLP shapes: in_dim=40 (MFCC features), hidden 64/32, 10 classes, batch 8.
    B, in_dim, H1, H2, out_dim = 8, 40, 64, 32, 10

    key = jax.random.PRNGKey(0)
    kx, k1, k2, k3 = jax.random.split(key, 4)

    x = jax.random.normal(kx, (B, in_dim), jnp.float32)
    w1, b1 = init_linear_params(k1, in_dim, H1)
    w2, b2 = init_linear_params(k2, H1, H2)
    w3, b3 = init_linear_params(k3, H2, out_dim)
    w3p, b3p = pad_fc3(w3, b3)

    out = mlp_forward(x, w1, b1, w2, b2, w3p, b3p, out_dim=out_dim)
    out = jax.block_until_ready(out)

    # Pure-JAX f32 reference. bf16 MXU inputs, bf16 output store and the
    # approx EUP reciprocal loosen the tolerance vs an exact f32 check.
    def ref(x):
        a = jnp.maximum(x @ w1 + b1, 0.0)
        a = jnp.maximum(a @ w2 + b2, 0.0)
        logits = a @ w3 + b3
        return jax.nn.softmax(logits, axis=1)

    expected = ref(x)
    assert out.shape == (B, out_dim)
    assert jnp.allclose(out, expected, atol=2e-2, rtol=2e-2)
    assert jnp.allclose(jnp.sum(out, axis=1), 1.0, atol=2e-2)

    print("KERNEL_OK")
</pallas_src>

<mosaic_0001>
module attributes {stable_mosaic.version = 11 : i64} {
  func.func @mlp_kernel(%arg0: i32, %arg1: memref<8x40xf32, #tpu.memory_space<vmem>>, %arg2: memref<40x64xbf16, #tpu.memory_space<vmem>>, %arg3: memref<1x64xf32, #tpu.memory_space<vmem>>, %arg4: memref<64x32xbf16, #tpu.memory_space<vmem>>, %arg5: memref<1x32xf32, #tpu.memory_space<vmem>>, %arg6: memref<32x128xbf16, #tpu.memory_space<vmem>>, %arg7: memref<1x128xf32, #tpu.memory_space<vmem>>, %arg8: memref<8x128xbf16, #tpu.memory_space<vmem>>) attributes {dimension_semantics = [#tpu.dimension_semantics<parallel>], iteration_bounds = array<i64: 1>, scalar_prefetch = 0 : i64, scratch_operands = 0 : i64, tpu.core_type = #tpu.core_type<tc>, window_params = [{transform_indices = @transform_0, window_bounds = array<i64: 8, 40>}, {pipeline_mode = #tpu.pipeline_mode<synchronous>, transform_indices = @transform_1, window_bounds = array<i64: 40, 64>}, {pipeline_mode = #tpu.pipeline_mode<synchronous>, transform_indices = @transform_2, window_bounds = array<i64: 1, 64>}, {pipeline_mode = #tpu.pipeline_mode<synchronous>, transform_indices = @transform_3, window_bounds = array<i64: 64, 32>}, {pipeline_mode = #tpu.pipeline_mode<synchronous>, transform_indices = @transform_4, window_bounds = array<i64: 1, 32>}, {pipeline_mode = #tpu.pipeline_mode<synchronous>, transform_indices = @transform_5, window_bounds = array<i64: 32, 128>}, {pipeline_mode = #tpu.pipeline_mode<synchronous>, transform_indices = @transform_6, window_bounds = array<i64: 1, 128>}, {transform_indices = @transform_7, window_bounds = array<i64: 8, 128>}]} {
    %c0 = arith.constant 0 : index
    %c0_0 = arith.constant 0 : index
    %0 = vector.load %arg1[%c0, %c0_0] : memref<8x40xf32, #tpu.memory_space<vmem>>, vector<8x40xf32>
    %1 = arith.truncf %0 : vector<8x40xf32> to vector<8x40xbf16>
    %c0_1 = arith.constant 0 : index
    %c0_2 = arith.constant 0 : index
    %2 = vector.load %arg2[%c0_1, %c0_2] : memref<40x64xbf16, #tpu.memory_space<vmem>>, vector<40x64xbf16>
    %cst = arith.constant dense<0.000000e+00> : vector<8x64xf32>
    %3 = tpu.matmul %1, %2, %cst {dimension_numbers = #tpu.dot_dimension_numbers<[1], [0], [0], [1], [0, 0, 1, 1], [], []>} : vector<8x40xbf16>, vector<40x64xbf16>, vector<8x64xf32> -> vector<8x64xf32>
    %c0_3 = arith.constant 0 : index
    %c0_4 = arith.constant 0 : index
    %4 = vector.load %arg3[%c0_3, %c0_4] : memref<1x64xf32, #tpu.memory_space<vmem>>, vector<1x64xf32>
    %5 = vector.broadcast %4 : vector<1x64xf32> to vector<8x64xf32>
    %6 = arith.addf %3, %5 : vector<8x64xf32>
    %cst_5 = arith.constant 0.000000e+00 : f32
    %7 = vector.broadcast %cst_5 : f32 to vector<8x64xf32>
    %8 = arith.maximumf %6, %7 : vector<8x64xf32>
    %9 = arith.truncf %8 : vector<8x64xf32> to vector<8x64xbf16>
    %c0_6 = arith.constant 0 : index
    %c0_7 = arith.constant 0 : index
    %10 = vector.load %arg4[%c0_6, %c0_7] : memref<64x32xbf16, #tpu.memory_space<vmem>>, vector<64x32xbf16>
    %cst_8 = arith.constant dense<0.000000e+00> : vector<8x32xf32>
    %11 = tpu.matmul %9, %10, %cst_8 {dimension_numbers = #tpu.dot_dimension_numbers<[1], [0], [0], [1], [0, 0, 1, 1], [], []>} : vector<8x64xbf16>, vector<64x32xbf16>, vector<8x32xf32> -> vector<8x32xf32>
    %c0_9 = arith.constant 0 : index
    %c0_10 = arith.constant 0 : index
    %12 = vector.load %arg5[%c0_9, %c0_10] : memref<1x32xf32, #tpu.memory_space<vmem>>, vector<1x32xf32>
    %13 = vector.broadcast %12 : vector<1x32xf32> to vector<8x32xf32>
    %14 = arith.addf %11, %13 : vector<8x32xf32>
    %cst_11 = arith.constant 0.000000e+00 : f32
    %15 = vector.broadcast %cst_11 : f32 to vector<8x32xf32>
    %16 = arith.maximumf %14, %15 : vector<8x32xf32>
    %17 = arith.truncf %16 : vector<8x32xf32> to vector<8x32xbf16>
    %c0_12 = arith.constant 0 : index
    %c0_13 = arith.constant 0 : index
    %18 = vector.load %arg6[%c0_12, %c0_13] : memref<32x128xbf16, #tpu.memory_space<vmem>>, vector<32x128xbf16>
    %cst_14 = arith.constant dense<0.000000e+00> : vector<8x128xf32>
    %19 = tpu.matmul %17, %18, %cst_14 {dimension_numbers = #tpu.dot_dimension_numbers<[1], [0], [0], [1], [0, 0, 1, 1], [], []>} : vector<8x32xbf16>, vector<32x128xbf16>, vector<8x128xf32> -> vector<8x128xf32>
    %c0_15 = arith.constant 0 : index
    %c0_16 = arith.constant 0 : index
    %20 = vector.load %arg7[%c0_15, %c0_16] : memref<1x128xf32, #tpu.memory_space<vmem>>, vector<1x128xf32>
    %21 = vector.broadcast %20 : vector<1x128xf32> to vector<8x128xf32>
    %22 = arith.addf %19, %21 : vector<8x128xf32>
    %cst_17 = arith.constant dense<0xFF800000> : vector<8xf32>
    %23 = vector.multi_reduction <maximumf>, %22, %cst_17 [1] : vector<8x128xf32> to vector<8xf32>
    %24 = vector.shape_cast %23 : vector<8xf32> to vector<8x1xf32>
    %25 = vector.broadcast %24 : vector<8x1xf32> to vector<8x128xf32>
    %26 = arith.subf %22, %25 : vector<8x128xf32>
    %27 = math.exp %26 : vector<8x128xf32>
    %cst_18 = arith.constant dense<0.000000e+00> : vector<8xf32>
    %28 = vector.multi_reduction <add>, %27, %cst_18 [1] : vector<8x128xf32> to vector<8xf32>
    %29 = vector.shape_cast %28 : vector<8xf32> to vector<8x1xf32>
    %30 = tpu.reciprocal %29 {approx = true} : vector<8x1xf32> -> vector<8x1xf32>
    %31 = vector.broadcast %30 : vector<8x1xf32> to vector<8x128xf32>
    %32 = arith.mulf %27, %31 : vector<8x128xf32>
    %33 = arith.truncf %32 : vector<8x128xf32> to vector<8x128xbf16>
    %c0_19 = arith.constant 0 : index
    %c0_20 = arith.constant 0 : index
    %34 = vector.load %arg8[%c0_19, %c0_20] : memref<8x128xbf16, #tpu.memory_space<vmem>>, vector<8x128xbf16>
    tpu.vector_store %arg8[%c0_19, %c0_20], %33 {strides = array<i32>} : memref<8x128xbf16, #tpu.memory_space<vmem>>, vector<8x128xbf16>,
    return
  }
  func.func @transform_0(%arg0: i32) -> (i32, i32) {
    %c0_i32 = arith.constant 0 : i32
    %c0_i32_0 = arith.constant 0 : i32
    return %arg0, %c0_i32 : i32, i32
  }
  func.func @transform_1(%arg0: i32) -> (i32, i32) {
    %c0_i32 = arith.constant 0 : i32
    %c0_i32_0 = arith.constant 0 : i32
    %c0_i32_1 = arith.constant 0 : i32
    return %c0_i32, %c0_i32_0 : i32, i32
  }
  func.func @transform_2(%arg0: i32) -> (i32, i32) {
    %c0_i32 = arith.constant 0 : i32
    %c0_i32_0 = arith.constant 0 : i32
    %c0_i32_1 = arith.constant 0 : i32
    return %c0_i32, %c0_i32_0 : i32, i32
  }
  func.func @transform_3(%arg0: i32) -> (i32, i32) {
    %c0_i32 = arith.constant 0 : i32
    %c0_i32_0 = arith.constant 0 : i32
    %c0_i32_1 = arith.constant 0 : i32
    return %c0_i32, %c0_i32_0 : i32, i32
  }
  func.func @transform_4(%arg0: i32) -> (i32, i32) {
    %c0_i32 = arith.constant 0 : i32
    %c0_i32_0 = arith.constant 0 : i32
    %c0_i32_1 = arith.constant 0 : i32
    return %c0_i32, %c0_i32_0 : i32, i32
  }
  func.func @transform_5(%arg0: i32) -> (i32, i32) {
    %c0_i32 = arith.constant 0 : i32
    %c0_i32_0 = arith.constant 0 : i32
    %c0_i32_1 = arith.constant 0 : i32
    return %c0_i32, %c0_i32_0 : i32, i32
  }
  func.func @transform_6(%arg0: i32) -> (i32, i32) {
    %c0_i32 = arith.constant 0 : i32
    %c0_i32_0 = arith.constant 0 : i32
    %c0_i32_1 = arith.constant 0 : i32
    return %c0_i32, %c0_i32_0 : i32, i32
  }
  func.func @transform_7(%arg0: i32) -> (i32, i32) {
    %c0_i32 = arith.constant 0 : i32
    %c0_i32_0 = arith.constant 0 : i32
    return %arg0, %c0_i32 : i32, i32
  }
}

</mosaic_0001>

<bundles_post_ra>
// kernel: _mlp_forward_padded.1
= control target key start
LH: loop header
LB: loop body
LE: loop exit
PB: predicated region body
PF: predicated region fallthrough
CT: control target
= control target key end

     0   :  { %vm61_vm0 = vcmask 1043456   ;;  %v379_v1 = vmov 0.0   ;;  %vm380_vm1 = vmmov 0   ;;  %s467_s0 = inlined_call_operand.vmem [shape: f32[8,40], index: 0, kind: input, shape index: {}]   ;;  %s468_s1 = inlined_call_operand.vmem [shape: bf16[40,64], index: 1, kind: input, shape index: {}]   ;;  %s469_s2 = inlined_call_operand.vmem [shape: f32[1,64], index: 2, kind: input, shape index: {}]   ;;  %s470_s3 = inlined_call_operand.vmem [shape: bf16[64,32], index: 3, kind: input, shape index: {}]   ;;  %s471_s4 = inlined_call_operand.vmem [shape: f32[1,32], index: 4, kind: input, shape index: {}]   ;;  %s472_s5 = inlined_call_operand.vmem [shape: bf16[32,128], index: 5, kind: input, shape index: {}]   ;;  %s473_s6 = inlined_call_operand.vmem [shape: f32[1,128], index: 6, kind: input, shape index: {}]   ;;  %s474_s7 = inlined_call_operand.hbm [shape: bf16[8,128], index: 7, kind: output, shape index: {}]  }
   0x1   :  { %v344_v0 = vld [vmem:[%s468_s1 + $0x10] ss:$0 sps:$4 sm:$0xff]   ;;  %311 = vmatprep.subr.bf16.mxu0 %v379_v1  ;;  %321 = vmatprep.subr.bf16.mxu1 %v379_v1  ;;  %v345_v3 = vld [vmem:[%s468_s1 + $0x8] sm:$0xff]   ;;  %v347_v4 = vld [vmem:[%s470_s3 + $0x18] sm:$0xff]  }
   0x2   :  { %v63_v2 = vsel %vm61_vm0, %v344_v0, 0  ;;  %317 = vmatprep.mubr.msk.bf16.mxu0 %vm380_vm1, %v379_v1  ;;  %329 = vmatprep.mubr.msk.bf16.mxu1 %vm380_vm1, %v379_v1  ;;  %v346_v5 = vld [vmem:[%s468_s1] sm:$0xff]   ;;  %v348_v7 = vld [vmem:[%s470_s3 + $0x10] sm:$0xff]  }
   0x3   :  { %312 = vmatpush3.bf16.msra.mxu0 %v63_v2  ;;  %v28_v6 = vld [vmem:[%s467_s0] sm:$0xff]  ;;  %322 = vmatpush3.bf16.msra.mxu1 %v347_v4 }
   0x4   :  { %313 = vmatprep.subr.bf16.mxu0 %v379_v1  ;;  %323 = vmatprep.subr.bf16.mxu1 %v379_v1 }
   0x7   :  { %314 = vmatpush3.bf16.msra.mxu0 %v345_v3 }
   0x8   :  { %315 = vmatprep.subr.bf16.mxu0 %v379_v1 }
   0x9   :  { %12 = vsyncpa [#allocation3], 0  ;;  %v29_v8 = vpack.c.bf16 %v28_v6, %v28_v6  ;;  %324 = vmatpush3.bf16.msra.mxu1 %v348_v7  ;;  %vm57_vm2 = vcmask 326656   ;;  %v349_v9 = vld [vmem:[%s470_s3 + $0x8] sm:$0xff]   ;;  %v350_v10 = vld [vmem:[%s470_s3] sm:$0xff]   ;;  %vm146_vm3 = vcmask 523264  }
   0xa   :  { %325 = vmatprep.subr.bf16.mxu1 %v379_v1  ;;  %v351_v11 = vld [vmem:[%s472_s5 + $0x8] sm:$0xff]   ;;  %v284_v12 = vld [vmem:[%s469_s2] ss:$0 sm:$0xff]  ;;  %vm215_vm4 = vcmask 261120  }
   0xb   :  { %316 = vmatpush3.bf16.msra.mxu0 %v346_v5  ;;  %v352_v20 = vld [vmem:[%s472_s5] sm:$0xff]  }
   0xc   :  { %333 = vmatprep.subr.bf16.mxu0 %v379_v1  ;;  %v289_v21 = vld [vmem:[%s471_s4] ss:$0 sm:$0xff]  ;;  %s381_s4 = smov [#allocation2]  }
   0xd   :  { %326 = vmatpush3.bf16.msra.mxu1 %v349_v9  ;;  %v295_v29 = vld [vmem:[%s473_s6] ss:$0 sm:$0xff]  ;;  %s276_s5 = sshll.u32 %s381_s4, 4  ;;  %s277_s5 = int_to_ptr.vmem [resolvable:$true] %s276_s5 }
   0xe   :  { %318 = vmatmul.mubr.msk.bf16.vlgmr.msra.gmra.mxu0 %vm57_vm2, %v29_v8  ;;  %327 = vmatprep.subr.bf16.mxu1 %v379_v1  ;;  %s357_s6 = scalar_lea.vmem %s277_s5, 64  ;;  %p362_p1 = scmp.lt.s32.totalorder %s277_s5, %s277_s5 }
   0xf   :  { %337 = vmatprep.mubr.msk.bf16.mxu0 %vm380_vm1, %v379_v1  ;;  %334 = vmatpush3.bf16.msra.mxu0 %v351_v11  ;;  %p358_p0 = scmp.ne.s32.totalorder %s277_s5, %s357_s6  ;;  %p363_p2 = scmp.lt.s32.totalorder %s357_s6, %s357_s6 }
  0x10   :  { %335 = vmatprep.subr.bf16.mxu0 %v379_v1 }
  0x11   :  { %328 = vmatpush3.bf16.msra.mxu1 %v350_v10  ;;  %p364_p3 = por %p363_p2, %p362_p1 }
  0x13   :  { %336 = vmatpush3.bf16.msra.mxu0 %v352_v20  ;;  %p365_p4 = pnand %p364_p3, %p358_p0 }
  0xce   :  { %v99_v13 = vpop.f32.mrf.mxu0 }
  0xcf   :  { %v100_v14 = vadd.f32 %v284_v12, %v99_v13 }
  0xd0   :  { %v319_v15 = vpop.f32.mrf.mxu0 }
  0xd1   :  { %v105_v16 = vmax.f32 %v100_v14, 0.0 }
  0xd2   :  { %v102_v17 = vpop.f32.mrf.mxu0 }
  0xd3   :  { %v106_v18 = vpack.c.bf16 %v105_v16, %v105_v16 }
  0xd4   :  { %v320_v19 = vpop.f32.mrf.mxu0 }
  0xd5   :  { %330 = vmatmul.mubr.msk.bf16.vlgmr.msra.gmra.mxu1 %vm146_vm3, %v106_v18 }
 0x195   :  { %v184_v22 = vpop.f32.mrf.mxu1 }
 0x196   :  { %v185_v23 = vadd.f32 %v289_v21, %v184_v22 }
 0x197   :  { %v331_v24 = vpop.f32.mrf.mxu1 }
 0x198   :  { %v190_v25 = vmax.f32 %v185_v23, 0.0 }
 0x199   :  { %v187_v26 = vpop.f32.mrf.mxu1 }
 0x19a   :  { %v191_v27 = vpack.c.bf16 %v190_v25, %v190_v25 }
 0x19b   :  { %v332_v28 = vpop.f32.mrf.mxu1 }
 0x19c   :  { %338 = vmatmul.mubr.msk.bf16.vlgmr.msra.gmra.mxu0 %vm215_vm4, %v191_v27 }
 0x25c   :  { %v253_v30 = vpop.f32.mrf.mxu0 }
 0x25d   :  { %v254_v31 = vadd.f32 %v295_v29, %v253_v30 }
 0x25e   :  { %v339_v32 = vpop.f32.mrf.mxu0 }
 0x25f   :  { %259 = vmax.xlane.f32.xlu0 %v254_v31 }
 0x260   :  { %v256_v33 = vpop.f32.mrf.mxu0 }
 0x262   :  { %v340_v34 = vpop.f32.mrf.mxu0 }
 0x2e8   :  { %v260_v35 = vpop.xlane.xlu0 %259 }
 0x2e9   :  { %v261_v36 = vsub.f32 %v254_v31, %v260_v35 }
 0x2eb   :  { %v262_v37 = vmul.f32 1.442695, %v261_v36 }
 0x2ed   :  { %353 = vpow2.f32 %v262_v37 }
 0x2fa   :  { %v354_v38 = vpop.eup %353 }
 0x2fb   :  { %264 = vadd.xlane.f32.xlu0 %v354_v38 }
 0x384   :  { %v265_v39 = vpop.xlane.xlu0 %264 }
 0x385   :  { %355 = vrcp.f32 %v265_v39 }
 0x392   :  { %v356_v40 = vpop.eup %355 }
 0x393   :  { %v267_v41 = vmul.f32 %v356_v40, %v354_v38 }
 0x395   :  { %v268_v42 = vpack.c.bf16 %v267_v41, %v267_v41 }
 0x397   :  { %269 = vst [vmem:[#allocation2] sm:$0xf] %v268_v42 }
 0x398   :  { %368 = shalt.err (!%p365_p4)
}
 0x399   :  { %279 = dma.vmem_to_hbm [thread:$0]  %s277_s5, 64, %s474_s7, [#allocation3]  }
 0x39a   :  { %377 = dma.done.wait [#allocation3], 64  }
 0x39b   :  { %378 = vsyncadd [#allocation3], 4294967232 }
 0x39c   :  { %283 = vsyncpa [#allocation3], 1 }

</bundles_post_ra>
